<compile_context>
chip_gen: v5e
topology: v5e:2x2
jax: 0.10.0
libtpu: 0.0.40
codegen_flags: <defaults>
</compile_context>

<pallas_src>
import functools

import jax
import jax.numpy as jnp
from jax import lax
from jax.experimental import pallas as pl
from jax.experimental.pallas import tpu as pltpu


def _round_up(x, m):
    return (x + m - 1) // m * m


def _choose_tiles(n):
    """(padded_n, tile_i, tile_j) with tile_i | padded_n and tile_j | padded_n.

    tile_i is a multiple of 8 (sublanes); tile_j is either the full padded
    length (lane constraint satisfied via 'equals array dim') or a multiple of
    128.  We produce >=2 i-tiles whenever possible (v7x megacore).
    """
    if n <= 128:
        npad = _round_up(max(n, 16), 16)
        return npad, npad // 2, npad
    npad = _round_up(n, 128)
    return npad, 128, 128


# ------------- fused geometry + filter-net + CFConv + update layer ----------
def _layer_kernel(cutoff,
                  pi_ref, bi_ref, pjt_ref, bj_ref, xpj_ref, xi_ref,
                  f1w_ref, f1b_ref, f2w_ref, f2b_ref,
                  l2w_ref, l2b_ref, low_ref, lob_ref,
                  o_ref, acc_ref):
    j_t = pl.program_id(1)

    @pl.when(j_t == 0)
    def _():
        acc_ref[...] = jnp.zeros_like(acc_ref)

    pi = pi_ref[...]                                    # [ti, 3] f32
    pjt = pjt_ref[...]                                  # [3, tj] f32
    ti, tj = pi.shape[0], pjt.shape[1]
    num_rbf = f1w_ref.shape[0]

    # ---- lane-dense [ti, tj] pair geometry & masks (full VPU occupancy) ----
    dx = pi[:, 0:1] - pjt[0:1, :]
    dy = pi[:, 1:2] - pjt[1:2, :]
    dz = pi[:, 2:3] - pjt[2:3, :]
    d = jnp.sqrt(dx * dx + dy * dy + dz * dz + 1e-12)   # [ti, tj]

    gi = pl.program_id(0) * ti + lax.broadcasted_iota(jnp.int32, (ti, tj), 0)
    gj = j_t * tj + lax.broadcasted_iota(jnp.int32, (ti, tj), 1)
    valid = (bi_ref[...] == bj_ref[...]) & (gi != gj) & (d < cutoff)
    cmask = jnp.where(valid,
                      0.5 * (jnp.cos(d * (jnp.pi / cutoff)) + 1.0),
                      0.0)                              # [ti, tj]

    # ---- RBF expansion (only here expand to [ti, tj, R]; exp on EUP) -------
    delta = cutoff / (num_rbf - 1)
    coeff = -0.5 / (delta * delta)
    offs = delta * lax.broadcasted_iota(
        jnp.int32, (1, 1, num_rbf), 2).astype(jnp.float32)
    rbf = jnp.exp(coeff * (d[:, :, None] - offs) ** 2)  # [ti, tj, R]

    # ---- filter network: flat 2-D MXU matmuls, bf16 in / f32 out -----------
    P = ti * tj
    h = jnp.dot(rbf.reshape(P, num_rbf).astype(jnp.bfloat16), f1w_ref[...],
                preferred_element_type=jnp.float32) + f1b_ref[...]
    h = h * jax.nn.sigmoid(h)                           # SiLU
    wflt = jnp.dot(h.astype(jnp.bfloat16), f2w_ref[...],
                   preferred_element_type=jnp.float32) + f2b_ref[...]  # [P,F]

    # ---- CFConv aggregation into the resident f32 accumulator --------------
    nfilt = wflt.shape[-1]
    msg = (wflt.reshape(ti, tj, nfilt)
           * cmask[:, :, None]
           * xpj_ref[...][None, :, :])                  # [ti, tj, F]
    acc_ref[...] += jnp.sum(msg, axis=1)

    # ---- epilogue: lin2 + SiLU + lin_out + residual (fused update) ---------
    @pl.when(j_t == pl.num_programs(1) - 1)
    def _():
        m = acc_ref[...]
        u = jnp.dot(m, l2w_ref[...],
                    preferred_element_type=jnp.float32) + l2b_ref[...]
        u = u * jax.nn.sigmoid(u)
        u = jnp.dot(u, low_ref[...],
                    preferred_element_type=jnp.float32) + lob_ref[...]
        o_ref[...] = xi_ref[...] + u


def fused_layer(pos_i, batch_i, pos_jt, batch_j, xproj, x,
                filt1, filt2, lin2, lin_out, *, ti, tj, cutoff):
    Np, H = x.shape
    F = xproj.shape[1]
    f1w, f1b = filt1
    f2w, f2b = filt2
    l2w, l2b = lin2
    low, lob = lin_out
    R, G = f1w.shape
    grid = (Np // ti, Np // tj)

    return pl.pallas_call(
        functools.partial(_layer_kernel, float(cutoff)),
        out_shape=jax.ShapeDtypeStruct((Np, H), jnp.float32),
        grid_spec=pltpu.PrefetchScalarGridSpec(
            num_scalar_prefetch=0,
            grid=grid,
            in_specs=[
                pl.BlockSpec((ti, 3), lambda i, j: (i, 0)),    # pos (i side)
                pl.BlockSpec((ti, 1), lambda i, j: (i, 0)),    # batch (i side)
                pl.BlockSpec((3, tj), lambda i, j: (0, j)),    # pos^T (j side)
                pl.BlockSpec((1, tj), lambda i, j: (0, j)),    # batch (j side)
                pl.BlockSpec((tj, F), lambda i, j: (j, 0)),    # xproj (j side)
                pl.BlockSpec((ti, H), lambda i, j: (i, 0)),    # x (residual)
                pl.BlockSpec((R, G), lambda i, j: (0, 0)),     # filt1 W (bf16)
                pl.BlockSpec((1, G), lambda i, j: (0, 0)),     # filt1 b
                pl.BlockSpec((G, F), lambda i, j: (0, 0)),     # filt2 W (bf16)
                pl.BlockSpec((1, F), lambda i, j: (0, 0)),     # filt2 b
                pl.BlockSpec((F, H), lambda i, j: (0, 0)),     # lin2 W
                pl.BlockSpec((1, H), lambda i, j: (0, 0)),     # lin2 b
                pl.BlockSpec((H, H), lambda i, j: (0, 0)),     # lin_out W
                pl.BlockSpec((1, H), lambda i, j: (0, 0)),     # lin_out b
            ],
            out_specs=pl.BlockSpec((ti, H), lambda i, j: (i, 0)),
            scratch_shapes=[pltpu.VMEM((ti, F), jnp.float32)],
        ),
        compiler_params=pltpu.CompilerParams(
            dimension_semantics=("parallel", "arbitrary"),
            vmem_limit_bytes=48 * 1024 * 1024),
    )(pos_i, batch_i, pos_jt, batch_j, xproj, x,
      f1w.astype(jnp.bfloat16), f1b.reshape(1, G),
      f2w.astype(jnp.bfloat16), f2b.reshape(1, F),
      l2w, l2b.reshape(1, H), low, lob.reshape(1, H))


# -------------------- per-layer CFConv lin1 projection ----------------------
def _proj_kernel(x_ref, w_ref, o_ref):
    o_ref[...] = jnp.dot(x_ref[...], w_ref[...],
                         preferred_element_type=jnp.float32)


def lin1_project(x, w, *, ti):
    Np, H = x.shape
    F = w.shape[1]
    return pl.pallas_call(
        _proj_kernel,
        out_shape=jax.ShapeDtypeStruct((Np, F), jnp.float32),
        grid_spec=pltpu.PrefetchScalarGridSpec(
            num_scalar_prefetch=0,
            grid=(Np // ti,),
            in_specs=[pl.BlockSpec((ti, H), lambda i: (i, 0)),
                      pl.BlockSpec((H, F), lambda i: (0, 0))],
            out_specs=pl.BlockSpec((ti, F), lambda i: (i, 0)),
        ),
        compiler_params=pltpu.CompilerParams(
            dimension_semantics=("parallel",)),
    )(x, w)


# ------------- fused Scalar head + (x*std) + scatter-add + mean -------------
def _head_scatter_kernel(num_mol, std, mean,
                         b_ref, x_ref, w1_ref, b1_ref, w2_ref, b2_ref,
                         o_ref, acc_ref):
    t = pl.program_id(0)

    @pl.when(t == 0)
    def _():
        acc_ref[...] = jnp.zeros_like(acc_ref)

    # output_model.pre_reduce (Scalar head: Linear / SiLU / Linear)
    u = jnp.dot(x_ref[...], w1_ref[...],
                preferred_element_type=jnp.float32) + b1_ref[...]
    u = u * jax.nn.sigmoid(u)
    y = jnp.dot(u, w2_ref[...],
                preferred_element_type=jnp.float32) + b2_ref[...]
    y = y * std                                          # x * std, [rows, 1]

    rows = x_ref.shape[0]
    mol = lax.broadcasted_iota(jnp.int32, (rows, num_mol), 1)
    onehot = (b_ref[...] == mol).astype(jnp.float32)     # [rows, M]
    acc_ref[...] += jnp.sum(onehot * y, axis=0, keepdims=True)   # [1, M]

    @pl.when(t == pl.num_programs(0) - 1)
    def _():
        o_ref[...] = acc_ref[...] + mean                 # + mean


def fused_head_scatter(x, batch_col, head1, head2, *, num_mol, std, mean, ti):
    Np, H = x.shape
    w1, b1 = head1
    w2, b2 = head2
    Hh = w1.shape[1]
    out = pl.pallas_call(
        functools.partial(_head_scatter_kernel, num_mol, float(std),
                          float(mean)),
        out_shape=jax.ShapeDtypeStruct((1, num_mol), jnp.float32),
        grid_spec=pltpu.PrefetchScalarGridSpec(
            num_scalar_prefetch=0,
            grid=(Np // ti,),
            in_specs=[
                pl.BlockSpec((ti, 1), lambda i: (i, 0)),
                pl.BlockSpec((ti, H), lambda i: (i, 0)),
                pl.BlockSpec((H, Hh), lambda i: (0, 0)),
                pl.BlockSpec((1, Hh), lambda i: (0, 0)),
                pl.BlockSpec((Hh, 1), lambda i: (0, 0)),
                pl.BlockSpec((1, 1), lambda i: (0, 0)),
            ],
            out_specs=pl.BlockSpec((1, num_mol), lambda i: (0, 0)),
            scratch_shapes=[pltpu.VMEM((1, num_mol), jnp.float32)],
        ),
        compiler_params=pltpu.CompilerParams(
            dimension_semantics=("arbitrary",)),
    )(batch_col, x, w1, b1.reshape(1, Hh), w2, b2.reshape(1, 1))
    return out.reshape(num_mol, 1)


# --------------------------- parameters (synthetic) -------------------------
def init_params(key, max_z=16, hidden=32, num_filters=32, num_rbf=16,
                num_layers=2):
    keys = jax.random.split(key, 3 + num_layers)

    def dense(k, din, dout, scale=0.1):
        return (jax.random.normal(k, (din, dout), jnp.float32) * scale,
                jnp.zeros((dout,), jnp.float32))

    params = {
        "embedding": jax.random.normal(keys[0], (max_z, hidden),
                                       jnp.float32) * 0.1,
        "layers": [],
    }
    for li in range(num_layers):
        lk = jax.random.split(keys[1 + li], 5)
        params["layers"].append({
            "filt1": dense(lk[0], num_rbf, num_filters),
            "filt2": dense(lk[1], num_filters, num_filters),
            "lin1": dense(lk[2], hidden, num_filters),   # CFConv lin1 (no bias)
            "lin2": dense(lk[3], num_filters, hidden),
            "lin_out": dense(lk[4], hidden, hidden),
        })
    hk = jax.random.split(keys[1 + num_layers], 2)
    params["head1"] = dense(hk[0], hidden, hidden // 2)
    params["head2"] = dense(hk[1], hidden // 2, 1)
    return params


# ------------------------------- forward pass -------------------------------
def torchmd_net_forward(params, z, pos, batch, num_mol,
                        num_rbf=16, cutoff=5.0, std=1.0, mean=0.0):
    N = z.shape[0]
    Np, TI, TJ = _choose_tiles(N)
    pad = Np - N

    z_p = jnp.pad(z.astype(jnp.int32), (0, pad))
    pos_p = jnp.pad(pos.astype(jnp.float32), ((0, pad), (0, 0)))
    b32 = batch.astype(jnp.int32)
    # Pad values chosen so padded atoms never pass the same-molecule test and
    # never hit a real molecule id in the scatter.
    batch_i = jnp.pad(b32, (0, pad), constant_values=-1).reshape(Np, 1)
    batch_j = jnp.pad(b32, (0, pad), constant_values=-2).reshape(1, Np)
    pos_i = pos_p                   # (Np, 3)  -> (ti, 3) blocks
    pos_jt = pos_p.T                # (3, Np)  -> (3, tj) blocks (lane-dense)

    # --- representation_model (TorchMD_GN / SchNet style) ---
    x = params["embedding"][z_p]                                  # [Np, H]

    for lp in params["layers"]:
        xproj = lin1_project(x, lp["lin1"][0], ti=TI)             # hoisted
        x = fused_layer(pos_i, batch_i, pos_jt, batch_j, xproj, x,
                        lp["filt1"], lp["filt2"], lp["lin2"], lp["lin_out"],
                        ti=TI, tj=TJ, cutoff=cutoff)

    # --- Scalar head, x*std, scatter(reduce='add'), +mean, identity post ---
    out = fused_head_scatter(x, batch_i, params["head1"], params["head2"],
                             num_mol=num_mol, std=std, mean=mean, ti=TI)

    # TODO(synk): derivative=True branch (forces = -d out / d pos) would wrap
    # this function in jax.grad; not emitted here (derivative=False).
    return out, None


# --------------------------- pure-JAX reference ------------------------------
def reference_forward(params, z, pos, batch, num_mol,
                      num_rbf=16, cutoff=5.0, std=1.0, mean=0.0):
    N = z.shape[0]
    x = params["embedding"][z]
    diff = pos[:, None, :] - pos[None, :, :]
    d = jnp.sqrt(jnp.sum(diff * diff, axis=-1) + 1e-12)
    same_mol = batch[:, None] == batch[None, :]
    not_self = ~jnp.eye(N, dtype=bool)
    pair_mask = (same_mol & not_self & (d < cutoff)).astype(jnp.float32)
    offsets = jnp.linspace(0.0, cutoff, num_rbf)
    coeff = -0.5 / (offsets[1] - offsets[0]) ** 2
    rbf = jnp.exp(coeff * (d[..., None] - offsets) ** 2)
    ccut = 0.5 * (jnp.cos(d * jnp.pi / cutoff) + 1.0)
    cmask = (pair_mask * ccut)[..., None]

    def silu(v):
        return v * jax.nn.sigmoid(v)

    for lp in params["layers"]:
        wf = silu(rbf.reshape(N * N, num_rbf) @ lp["filt1"][0] + lp["filt1"][1])
        wf = wf @ lp["filt2"][0] + lp["filt2"][1]
        w_pair = wf.reshape(N, N, -1)
        x_proj = x @ lp["lin1"][0]
        msg = jnp.sum(w_pair * cmask * x_proj[None, :, :], axis=1)
        h = silu(msg @ lp["lin2"][0] + lp["lin2"][1])
        h = h @ lp["lin_out"][0] + lp["lin_out"][1]
        x = x + h
    y = silu(x @ params["head1"][0] + params["head1"][1])
    y = y @ params["head2"][0] + params["head2"][1]
    onehot = (batch[None, :] == jnp.arange(num_mol)[:, None]).astype(jnp.float32)
    return onehot @ (y * std) + mean


# ----------------------------------- main -----------------------------------
if __name__ == "__main__":
    key = jax.random.PRNGKey(0)
    kz, kp, kw = jax.random.split(key, 3)

    N_ATOMS = 8
    NUM_MOL = 2
    z = jax.random.randint(kz, (N_ATOMS,), 1, 16)                 # atomic numbers
    pos = jax.random.normal(kp, (N_ATOMS, 3), jnp.float32) * 1.5  # coordinates
    batch = jnp.array([0, 0, 0, 0, 1, 1, 1, 1], dtype=jnp.int32)  # molecule ids

    params = init_params(kw)

    out, forces = torchmd_net_forward(params, z, pos, batch, NUM_MOL,
                                      std=1.0, mean=0.0)
    out = jax.block_until_ready(out)

    assert out.shape == (NUM_MOL, 1) and out.dtype == jnp.float32
    assert forces is None
    assert bool(jnp.all(jnp.isfinite(out)))

    ref = reference_forward(params, z, pos, batch, NUM_MOL, std=1.0, mean=0.0)
    assert jnp.allclose(out, ref, rtol=5e-2, atol=5e-3), (out, ref)

    print("KERNEL_OK")
</pallas_src>

<mosaic_0001>
module attributes {stable_mosaic.version = 11 : i64} {
  func.func @_proj_kernel(%arg0: i32, %arg1: memref<8x32xf32, #tpu.memory_space<vmem>>, %arg2: memref<32x32xf32, #tpu.memory_space<vmem>>, %arg3: memref<8x32xf32, #tpu.memory_space<vmem>>) attributes {dimension_semantics = [#tpu.dimension_semantics<parallel>], iteration_bounds = array<i64: 2>, scalar_prefetch = 0 : i64, scratch_operands = 0 : i64, tpu.core_type = #tpu.core_type<tc>, window_params = [{transform_indices = @transform_0, window_bounds = array<i64: 8, 32>}, {pipeline_mode = #tpu.pipeline_mode<synchronous>, transform_indices = @transform_1, window_bounds = array<i64: 32, 32>}, {transform_indices = @transform_2, window_bounds = array<i64: 8, 32>}]} {
    %c0 = arith.constant 0 : index
    %c0_0 = arith.constant 0 : index
    %0 = vector.load %arg1[%c0, %c0_0] : memref<8x32xf32, #tpu.memory_space<vmem>>, vector<8x32xf32>
    %c0_1 = arith.constant 0 : index
    %c0_2 = arith.constant 0 : index
    %1 = vector.load %arg2[%c0_1, %c0_2] : memref<32x32xf32, #tpu.memory_space<vmem>>, vector<32x32xf32>
    %cst = arith.constant dense<0.000000e+00> : vector<8x32xf32>
    %2 = tpu.matmul %0, %1, %cst {dimension_numbers = #tpu.dot_dimension_numbers<[1], [0], [0], [1], [0, 0, 1, 1], [], []>} : vector<8x32xf32>, vector<32x32xf32>, vector<8x32xf32> -> vector<8x32xf32>
    %c0_3 = arith.constant 0 : index
    %c0_4 = arith.constant 0 : index
    %3 = vector.load %arg3[%c0_3, %c0_4] : memref<8x32xf32, #tpu.memory_space<vmem>>, vector<8x32xf32>
    tpu.vector_store %arg3[%c0_3, %c0_4], %2 {strides = array<i32>} : memref<8x32xf32, #tpu.memory_space<vmem>>, vector<8x32xf32>,
    return
  }
  func.func @transform_0(%arg0: i32) -> (i32, i32) {
    %c0_i32 = arith.constant 0 : i32
    %c0_i32_0 = arith.constant 0 : i32
    return %arg0, %c0_i32 : i32, i32
  }
  func.func @transform_1(%arg0: i32) -> (i32, i32) {
    %c0_i32 = arith.constant 0 : i32
    %c0_i32_0 = arith.constant 0 : i32
    %c0_i32_1 = arith.constant 0 : i32
    return %c0_i32, %c0_i32_0 : i32, i32
  }
  func.func @transform_2(%arg0: i32) -> (i32, i32) {
    %c0_i32 = arith.constant 0 : i32
    %c0_i32_0 = arith.constant 0 : i32
    return %arg0, %c0_i32 : i32, i32
  }
}

</mosaic_0001>

<bundles_post_ra>
// kernel: tpu_custom_call.1
= control target key start
LH: loop header
LB: loop body
LE: loop exit
PB: predicated region body
PF: predicated region fallthrough
CT: control target
= control target key end

     0   :  { %7 = vsyncpa [#allocation3], 0  ;;  %s664_s0 = inlined_call_operand.hbm [shape: f32[16,32], index: 0, kind: input, shape index: {}]   ;;  %s665_s1 = inlined_call_operand.hbm [shape: f32[32,32], index: 1, kind: input, shape index: {}]   ;;  %s666_s2 = inlined_call_operand.hbm [shape: f32[16,32], index: 2, kind: output, shape index: {}]  }
   0x1   :  { %9 = vsyncpa [#allocation3 + $0x1], 0 }
   0x2   :  { %10 = vsyncpa [#allocation6], 0 }
   0x3   :  { %11 = vsyncpa [#allocation4], 0 }
   0x4   :  { %13 = vsyncpa [#allocation4 + $0x1], 0  ;;  %s528_s9 = smov 0   ;;  %s530_s10 = smov 0  }
   0x5   :  { %s532_s11 = smov 0   ;;  %s534_s12 = smov 0  }
   0x6 LB: > { %s108_s15 = sshll.u32 %s665_s1, 4  ;;  %s552_s16 = sadd.s32 4294967295, %s508_s12   ;;  %s508_s12 = sphi %s534_s12, %s676_s12   ;;  %s504_s11 = sphi %s532_s11, %s675_s11   ;;  %s500_s10 = sphi %s530_s10, %s674_s10   ;;  %s496_s9 = sphi %s528_s9, %s673_s9   ;;  %s109_s15 = int_to_ptr.hbm [resolvable:$true] %s108_s15 }
   0x7   : > { %p305_p0 = scmp.ge.s32.totalorder %s508_s12, 1  ;;  %p40_p1 = scmp.eq.s32.totalorder %s552_s16, 0 }
   0x8   : > { %p97_p2 = scmp.lt.s32.totalorder %s508_s12, 3  ;;  %s510_s18 = smov [#allocation5]  }
   0x9   : > { %s110_s19 = sshll.u32 %s510_s18, 4  ;;  %s511_s20 = smov 128   ;;  %s111_s19 = int_to_ptr.vmem [resolvable:$true] %s110_s19 }
   0xa   : > { %p557_p3 = pnand %p305_p0, %p97_p2  ;;  %s512_s21 = smov 8  }
   0xb   : > { %s304_s22 = sadd.s32 4294967294, %s508_s12   ;;  %s568_s23 = sadd.s32 1, %s508_s12  }
   0xc   : > { %p327_p4 = pneg %p557_p3  ;;  %s26_s24 = sadd.s32 1, %s504_s11 }
   0xd   : > { %s23_s25 = ssub.s32 %s508_s12, %s568_s23  ;;  %p33_p7 = scmp.ne.s32.totalorder %s504_s11, %s500_s10 }
   0xe   : > { %p328_p6 = pnand %p327_p4, %p40_p1  ;;  %p24_p8 = scmp.eq.s32.totalorder %s23_s25, 0 }
   0xf   : > { %p34_p9 = scmp.eq.s32.totalorder %s508_s12, 0  ;;  %p39_p10 = scmp.ne.s32.totalorder %s500_s10, %s496_s9 }
  0x10   : > { %330 = dma.hbm_to_vmem [thread:$0]  (!%p328_p6), %s109_s15, 512, %s111_s19, [#allocation6], %s511_s20, %s511_s20, %s512_s21  }
  0x11   : > { %p84_p11 = scmp.eq.s32.totalorder %s552_s16, 1  ;;  %p584_p12 = por %p40_p1, %p39_p10 }
  0x12   : > { %s580_s26 = scalar_select %p24_p8, %s504_s11, %s26_s24  }
  0x13   : > { %p588_p13 = por %p84_p11, %p33_p7  ;;  %p90_p0 = scmp.eq.s32.totalorder %s304_s22, 1 }
  0x14   : > { %p35_p2 = por %p34_p9, %p33_p7  ;;  %s124_s29 = sand.u32 1, %s504_s11  }
  0x15   : > { %p593_p4 = por %p90_p0, %p39_p10  ;;  %p340_p6 = scmp.lt.s32.totalorder %s508_s12, 2 }
  0x16   : > { %s308_s3 = sshll.u32 %s124_s29, 3  ;;  %s309_s4 = sshll.u32 %s508_s12, 3 }
  0x17   : > { %s132_s7 = scalar_lea.hbm %s664_s0, %s309_s4  ;;  %s128_s13 = scalar_lea.vmem [#allocation2], %s308_s3 }
  0x18   : > { %s134_s8 = sshll.u32 %s132_s7, 4  ;;  %s136_s14 = sshll.u32 %s128_s13, 4  ;;  %s135_s8 = int_to_ptr.hbm [resolvable:$true] %s134_s8  ;;  %s137_s14 = int_to_ptr.vmem [resolvable:$true] %s136_s14 }
  0x19   : > { %p602_p8 = pnand %p340_p6, %p35_p2  ;;  %s125_s18 = scalar_lea.sflag [#allocation3], %s124_s29 }
  0x1a   : > { %s408_s19 = sshra.s32 %s135_s8, 4  ;;  %s415_s24 = scalar_lea.hbm %s664_s0, 16  ;;  %s409_s19 = int_to_ptr.hbm [resolvable:$true] %s408_s19 }
  0x1b   : > { %s410_s20 = scalar_lea.hbm %s409_s19, 8  ;;  %p412_p9 = pneg %p602_p8 }
  0x1c   : > { %p411_p7 = scmp.ne.s32.totalorder %s409_s19, %s410_s20  ;;  %p416_p0 = scmp.lt.s32.totalorder %s409_s19, %s664_s0 }
  0x1d   : > { %p417_p2 = scmp.lt.s32.totalorder %s415_s24, %s410_s20 }
  0x1e   : > { %p413_p10 = pnand %p412_p9, %p411_p7 }
  0x1f   : > { %p418_p6 = por %p417_p2, %p416_p0 }
  0x20   : > { %p414_p11 = pneg %p413_p10 }
  0x22   : > { %p419_p5 = pnand %p418_p6, %p414_p11 }
  0x24   : > { %422 = shalt.err (!%p419_p5)
}
  0x25   : > { %334 = dma.hbm_to_vmem [thread:$0]  (!%p602_p8), %s135_s8, 128, %s137_s14, %s125_s18  }
  0x26   : > { %145 = sbr.rel (%p557_p3) target bundleno = 183 (0xb7), region = 28  ;;  %s619_s29 = sand.u32 (!%p557_p3), 1, %s500_s10  }
  0x27   : > { %s311_s4 = sshll.u32 (!%p557_p3), %s619_s29, 3  ;;  %s148_s5 = scalar_lea.sflag (!%p557_p3), [#allocation3], %s619_s29 }
  0x28   : > { %s151_s6 = scalar_lea.vmem (!%p557_p3), [#allocation2], %s311_s4 }
  0x2b   : > { %483 = dma.done.wait (%p584_p12), %s148_s5, 128  }
  0x2c   : > { %485 = vsyncadd (%p584_p12), %s148_s5, 4294967168 }
  0x2d   : > { %487 = dma.done.wait (%p40_p1), [#allocation6], 512  }
  0x2e   : > { %489 = vsyncadd (%p40_p1), [#allocation6], 4294966784  ;;  %v182_v0 = vld [vmem:[#allocation5 + $0x18] sm:$0xff]  ;;  %v181_v1 = vld [vmem:[#allocation5 + $0x10] sm:$0xff]  ;;  %vm183_vm0 = vcmask 261120   ;;  %s316_s17 = sshll.u32 %s552_s16, 3 }
  0x2f   : > { %199 = vmatpush.msra.mxu0 %v182_v0  ;;  %v180_v2 = vld [vmem:[#allocation5 + $0x8] sm:$0xff]  ;;  %v179_v3 = vld [vmem:[#allocation5] sm:$0xff]  ;;  %v178_v4 = vld [vmem:[%s151_s6] sm:$0xff]  ;;  %s219_s8 = scalar_lea.hbm %s666_s2, %s316_s17  ;;  %s177_s13 = scalar_lea.vmem [#allocation7], %s311_s4 }
  0x30   : > { %s221_s14 = sshll.u32 %s177_s13, 4  ;;  %s223_s15 = sshll.u32 %s219_s8, 4  ;;  %s222_s14 = int_to_ptr.vmem [resolvable:$true] %s221_s14  ;;  %s224_s15 = int_to_ptr.hbm [resolvable:$true] %s223_s15 }
  0x31   : > { %200 = vmatpush.msra.mxu0 %v181_v1  ;;  %s209_s18 = scalar_lea.sflag [#allocation4], %s619_s29  ;;  %s452_s19 = sshra.s32 %s224_s15, 4  ;;  %s453_s19 = int_to_ptr.hbm [resolvable:$true] %s452_s19 }
  0x32   : > { %s454_s20 = scalar_lea.hbm %s453_s19, 8  ;;  %s458_s22 = scalar_lea.hbm %s666_s2, 16 }
  0x33   : > { %201 = vmatpush.msra.mxu0 %v180_v2  ;;  %p455_p1 = scmp.ne.s32.totalorder %s453_s19, %s454_s20  ;;  %p459_p12 = scmp.lt.s32.totalorder %s453_s19, %s666_s2 }
  0x34   : > { %p460_p8 = scmp.lt.s32.totalorder %s458_s22, %s454_s20 }
  0x35   : > { %202 = vmatpush.msra.mxu0 %v179_v3  ;;  %p456_p3 = pnand %p455_p1, %p588_p13 }
  0x36   : > { %314 = vmatmul.msk.f32.vlgmr.msra.gmra.mxu0 %vm183_vm0, %v178_v4  ;;  %p461_p7 = por %p460_p8, %p459_p12 }
  0x37   : > { %p457_p5 = pneg %p456_p3 }
  0x39   : > { %p462_p9 = pnand %p461_p7, %p457_p5 }
  0xb3   : > { %v204_v5 = vpop.f32.mrf.mxu0 }
  0xb4   : > { %207 = vst.msk [vmem:[%s177_s13] sm:$0xff] %vm183_vm0, %v204_v5 }
  0xb5   : > { %465 = shalt.err (!%p462_p9)
}
  0xb6   : > { %325 = dma.vmem_to_hbm [thread:$0]  (%p588_p13), %s222_s14, 128, %s224_s15, %s209_s18  }
  0xb7 PF: > { %s235_s3 = sand.u32 1, %s496_s9   ;;  %p672_p10 = scmp.ge.s32.totalorder %s508_s12, 2 }
  0xb8   : > { %s236_s29 = scalar_lea.sflag [#allocation4], %s235_s3 }
  0xb9   : > { %p336_p11 = pnand %p672_p10, %p593_p4 }
  0xbb   : > { %p337_p0 = pneg %p336_p11 }
  0xbd   : > { %491 = dma.done.wait (%p337_p0), %s236_s29, 128  }
  0xbe   : > { %493 = vsyncadd (%p337_p0), %s236_s29, 4294967168  ;;  %p16_p2 = scmp.ge.s32.totalorder %s568_s23, 4   ;;  %s673_s9 = smov %s500_s10 }
  0xbf   : > { %s674_s10 = smov %s504_s11  ;;  %s675_s11 = smov %s580_s26 }
  0xc0   : > { %s676_s12 = smov %s568_s23  ;;  %18 = sbr.rel (!%p16_p2) target bundleno = 6 (0x6), region = 77 }
  0xc5   :  { %242 = vsyncpa [#allocation3], 1 }
  0xc6   :  { %244 = vsyncpa [#allocation3 + $0x1], 1 }
  0xc7   :  { %245 = vsyncpa [#allocation6], 1 }
  0xc8   :  { %246 = vsyncpa [#allocation4], 1 }
  0xc9   :  { %248 = vsyncpa [#allocation4 + $0x1], 1 }

</bundles_post_ra>
